<compile_context>
chip_gen: v6e
topology: v6e:2x2x1
jax: 0.10.0
libtpu: 0.0.40
codegen_flags: <defaults>
</compile_context>

<pallas_src>
import math

import jax
import jax.numpy as jnp
from jax.experimental import pallas as pl
from jax.experimental.pallas import tpu as pltpu


def _round_up(x: int, m: int) -> int:
    return ((x + m - 1) // m) * m


def _cdiv(a: int, b: int) -> int:
    return (a + b - 1) // b


def _gemm_bias_kernel_single(p_ref, w_ref, b_ref, o_ref):
    """One (TM, Ct) output tile, whole contraction in one MXU pass.

    p_ref: (TM, K)  im2col patch tile     w_ref: (K, Ct) weight slab tile
    b_ref: (1, Ct)  bias (f32)            o_ref: (TM, Ct) output tile
    """
    acc = jnp.dot(p_ref[...], w_ref[...], preferred_element_type=jnp.float32)
    o_ref[...] = (acc + b_ref[...]).astype(o_ref.dtype)


def _gemm_bias_kernel_ktiled(p_ref, w_ref, b_ref, o_ref, acc_ref):
    """K-tiled variant with a persistent f32 VMEM accumulator."""
    kk = pl.program_id(2)

    @pl.when(kk == 0)
    def _init():
        acc_ref[...] = jnp.zeros_like(acc_ref)

    acc_ref[...] += jnp.dot(p_ref[...], w_ref[...],
                            preferred_element_type=jnp.float32)

    @pl.when(kk == pl.num_programs(2) - 1)
    def _finalize():
        o_ref[...] = (acc_ref[...] + b_ref[...]).astype(o_ref.dtype)


def equalized_conv2d(x_nchw, weight_oihw, bias, padding: int, *,
                     matmul_dtype=jnp.bfloat16,
                     tile_m: int = 512,
                     max_tile_k: int = 2048):
    """Forward pass of EqualizedConv2d (stride=1, dilation=1, groups=1).

    x_nchw:      (N, Cin, H, W)
    weight_oihw: (Cout, Cin, k, k)  raw (unscaled) weight
    bias:        (Cout,)
    Returns (N, Cout, Hout, Wout) == F.conv2d(x, w * c, bias, padding=padding).
    """
    n, cin, h, w = x_nchw.shape
    cout, cin_w, k, k2 = weight_oihw.shape
    assert cin_w == cin and k2 == k
    out_dtype = x_nchw.dtype

    # Learning-rate equalization scale (parameter setup, plain JAX).
    c = 1.0 / math.sqrt(cin * k * k)

    hout = h + 2 * padding - k + 1
    wout = w + 2 * padding - k + 1

    # ---- im2col prologue (one fused XLA pass; folds the zero padding) -------
    # TODO(synk): for the memory-bound large-spatial / small-channel regime the
    # k*k patch blow-up should be fused into the kernel via manual halo DMAs;
    # here the hot loop is kept pure-MXU with im2col in the wrapper.
    x_nhwc = jnp.transpose(x_nchw, (0, 2, 3, 1))
    x_pad = jnp.pad(x_nhwc, ((0, 0), (padding, padding),
                             (padding, padding), (0, 0)))
    taps = [x_pad[:, kh:kh + hout, kw:kw + wout, :]
            for kh in range(k) for kw in range(k)]
    kdim = k * k * cin
    patches = jnp.concatenate(taps, axis=-1).reshape(n * hout * wout, kdim)
    patches = patches.astype(matmul_dtype)       # bf16 halves HBM/DMA bytes

    # Weight slab (k*k*Cin, Cout); (kh, kw, ci) ordering matches `taps`.
    w_slab = jnp.transpose(weight_oihw * c, (2, 3, 1, 0)).reshape(kdim, cout)

    # ---- tiling / padding for lane-dense, MXU-aligned blocks ----------------
    m = n * hout * wout
    tm = min(tile_m, _round_up(m, 16))            # sublane-aligned row tile
    m_pad = _round_up(m, tm)

    cout_pad = max(128, _round_up(cout, 128))     # lane-dense output columns
    ct = 256 if cout_pad % 256 == 0 else 128

    if kdim <= max_tile_k:                        # whole contraction, 1 block
        nk, tk, k_pad = 1, kdim, kdim
    else:                                         # tile the contraction dim
        nk = _cdiv(kdim, max_tile_k)
        tk = _round_up(_cdiv(kdim, nk), 128)
        k_pad = nk * tk

    patches = jnp.pad(patches, ((0, m_pad - m), (0, k_pad - kdim)))
    w_slab = jnp.pad(w_slab, ((0, k_pad - kdim),
                              (0, cout_pad - cout))).astype(matmul_dtype)
    b_pad = jnp.pad(bias.astype(jnp.float32),
                    (0, cout_pad - cout)).reshape(1, cout_pad)

    # ---- explicit VMEM budget (v7x: 64 MiB physical, 32 MiB default scoped) -
    it_in = jnp.dtype(matmul_dtype).itemsize
    it_out = jnp.dtype(out_dtype).itemsize
    vmem_need = (2 * tm * tk * it_in              # patch tile, double-buffered
                 + 2 * tk * ct * it_in            # weight tile, double-buffered
                 + 2 * ct * 4                     # bias
                 + 2 * tm * ct * it_out)          # output tile, double-buffered
    if nk > 1:
        vmem_need += tm * ct * 4                  # f32 accumulator scratch
    vmem_limit = min(48 * 1024 * 1024,
                     max(4 * 1024 * 1024, 2 * vmem_need + (1 << 20)))

    cost = pl.CostEstimate(
        flops=2 * m * kdim * cout,
        transcendentals=0,
        bytes_accessed=int(patches.size * it_in + w_slab.size * it_in
                           + m * cout * it_out),
    )

    if nk == 1:
        # -------- specialised 2-D grid: no accumulator, all-parallel grid ----
        out = pl.pallas_call(
            _gemm_bias_kernel_single,
            out_shape=jax.ShapeDtypeStruct((m_pad, cout_pad), out_dtype),
            grid_spec=pltpu.PrefetchScalarGridSpec(
                num_scalar_prefetch=0,
                grid=(m_pad // tm, cout_pad // ct),
                in_specs=[
                    pl.BlockSpec((tm, tk), lambda i, j: (i, 0)),
                    pl.BlockSpec((tk, ct), lambda i, j: (0, j)),
                    pl.BlockSpec((1, ct), lambda i, j: (0, j)),
                ],
                out_specs=pl.BlockSpec((tm, ct), lambda i, j: (i, j)),
            ),
            compiler_params=pltpu.CompilerParams(
                dimension_semantics=("parallel", "parallel"),
                vmem_limit_bytes=vmem_limit,
            ),
            cost_estimate=cost,
        )(patches, w_slab, b_pad)
    else:
        # -------- K-tiled 3-D grid with f32 VMEM accumulator -----------------
        out = pl.pallas_call(
            _gemm_bias_kernel_ktiled,
            out_shape=jax.ShapeDtypeStruct((m_pad, cout_pad), out_dtype),
            grid_spec=pltpu.PrefetchScalarGridSpec(
                num_scalar_prefetch=0,
                grid=(m_pad // tm, cout_pad // ct, nk),
                in_specs=[
                    pl.BlockSpec((tm, tk), lambda i, j, kk: (i, kk)),
                    pl.BlockSpec((tk, ct), lambda i, j, kk: (kk, j)),
                    pl.BlockSpec((1, ct), lambda i, j, kk: (0, j)),
                ],
                out_specs=pl.BlockSpec((tm, ct), lambda i, j, kk: (i, j)),
                scratch_shapes=[pltpu.VMEM((tm, ct), jnp.float32)],
            ),
            compiler_params=pltpu.CompilerParams(
                dimension_semantics=("parallel", "parallel", "arbitrary"),
                vmem_limit_bytes=vmem_limit,
            ),
            cost_estimate=cost,
        )(patches, w_slab, b_pad)

    # Un-pad and return to the PyTorch NCHW boundary layout (slice + reshape +
    # transpose fuse into a single XLA copy).
    out = out[:m, :cout].reshape(n, hout, wout, cout)
    return jnp.transpose(out, (0, 3, 1, 2))


if __name__ == "__main__":
    # Module config (small shapes): in_features=4, out_features=8, kernel=3, padding=1
    N, CIN, H, W = 2, 4, 16, 16
    COUT, K, PAD = 8, 3, 1

    key = jax.random.PRNGKey(0)
    kx, kw_key = jax.random.split(key)
    x = jax.random.normal(kx, (N, CIN, H, W), dtype=jnp.float32)
    weight = jax.random.normal(kw_key, (COUT, CIN, K, K), dtype=jnp.float32)  # torch.randn
    bias = jnp.ones((COUT,), dtype=jnp.float32)                               # torch.ones

    c = 1.0 / math.sqrt(CIN * K * K)

    # Default (bf16 MXU inputs, f32 accumulate) — check against a reference
    # that applies the same bf16 rounding to the matmul inputs.
    out = jax.block_until_ready(equalized_conv2d(x, weight, bias, PAD))
    assert out.shape == (N, COUT, H, W)
    xb = x.astype(jnp.bfloat16).astype(jnp.float32)
    wb = (weight * c).astype(jnp.bfloat16).astype(jnp.float32)
    ref_bf16 = jax.lax.conv_general_dilated(
        xb, wb, window_strides=(1, 1), padding=[(PAD, PAD), (PAD, PAD)],
        dimension_numbers=("NCHW", "OIHW", "NCHW"),
    ) + bias.reshape(1, COUT, 1, 1)
    assert jnp.allclose(out, ref_bf16, atol=2e-2, rtol=2e-2)

    # Full-f32 matmul path — tight check against the exact reference.
    out_f32 = jax.block_until_ready(
        equalized_conv2d(x, weight, bias, PAD, matmul_dtype=jnp.float32))
    ref_f32 = jax.lax.conv_general_dilated(
        x, weight * c, window_strides=(1, 1), padding=[(PAD, PAD), (PAD, PAD)],
        dimension_numbers=("NCHW", "OIHW", "NCHW"),
    ) + bias.reshape(1, COUT, 1, 1)
    assert jnp.allclose(out_f32, ref_f32, atol=1e-4, rtol=1e-4)

    # Exercise the K-tiled (3-D grid) path with a tiny max_tile_k.
    out_kt = jax.block_until_ready(
        equalized_conv2d(x, weight, bias, PAD, matmul_dtype=jnp.float32,
                         max_tile_k=16))
    assert jnp.allclose(out_kt, ref_f32, atol=1e-4, rtol=1e-4)

    print("KERNEL_OK")
</pallas_src>

<mosaic_0001>
module attributes {stable_mosaic.version = 11 : i64} {
  func.func @_gemm_bias_kernel_single(%arg0: i32, %arg1: i32, %arg2: memref<512x36xbf16, #tpu.memory_space<vmem>>, %arg3: memref<36x128xbf16, #tpu.memory_space<vmem>>, %arg4: memref<1x128xf32, #tpu.memory_space<vmem>>, %arg5: memref<512x128xf32, #tpu.memory_space<vmem>>) attributes {dimension_semantics = [#tpu.dimension_semantics<parallel>, #tpu.dimension_semantics<parallel>], iteration_bounds = array<i64: 1, 1>, scalar_prefetch = 0 : i64, scratch_operands = 0 : i64, tpu.core_type = #tpu.core_type<tc>, window_params = [{transform_indices = @transform_0, window_bounds = array<i64: 512, 36>}, {transform_indices = @transform_1, window_bounds = array<i64: 36, 128>}, {transform_indices = @transform_2, window_bounds = array<i64: 1, 128>}, {transform_indices = @transform_3, window_bounds = array<i64: 512, 128>}]} {
    %c0 = arith.constant 0 : index
    %c0_0 = arith.constant 0 : index
    %0 = vector.load %arg2[%c0, %c0_0] : memref<512x36xbf16, #tpu.memory_space<vmem>>, vector<512x36xbf16>
    %c0_1 = arith.constant 0 : index
    %c0_2 = arith.constant 0 : index
    %1 = vector.load %arg3[%c0_1, %c0_2] : memref<36x128xbf16, #tpu.memory_space<vmem>>, vector<36x128xbf16>
    %cst = arith.constant dense<0.000000e+00> : vector<512x128xf32>
    %2 = tpu.matmul %0, %1, %cst {dimension_numbers = #tpu.dot_dimension_numbers<[1], [0], [0], [1], [0, 0, 1, 1], [], []>} : vector<512x36xbf16>, vector<36x128xbf16>, vector<512x128xf32> -> vector<512x128xf32>
    %c0_3 = arith.constant 0 : index
    %c0_4 = arith.constant 0 : index
    %3 = vector.load %arg4[%c0_3, %c0_4] : memref<1x128xf32, #tpu.memory_space<vmem>>, vector<1x128xf32>
    %4 = vector.broadcast %3 : vector<1x128xf32> to vector<512x128xf32>
    %5 = arith.addf %2, %4 : vector<512x128xf32>
    %c0_5 = arith.constant 0 : index
    %c0_6 = arith.constant 0 : index
    %6 = vector.load %arg5[%c0_5, %c0_6] : memref<512x128xf32, #tpu.memory_space<vmem>>, vector<512x128xf32>
    tpu.vector_store %arg5[%c0_5, %c0_6], %5 {strides = array<i32>} : memref<512x128xf32, #tpu.memory_space<vmem>>, vector<512x128xf32>,
    return
  }
  func.func @transform_0(%arg0: i32, %arg1: i32) -> (i32, i32) {
    %c0_i32 = arith.constant 0 : i32
    %c0_i32_0 = arith.constant 0 : i32
    return %arg0, %c0_i32 : i32, i32
  }
  func.func @transform_1(%arg0: i32, %arg1: i32) -> (i32, i32) {
    %c0_i32 = arith.constant 0 : i32
    %c0_i32_0 = arith.constant 0 : i32
    return %c0_i32, %arg1 : i32, i32
  }
  func.func @transform_2(%arg0: i32, %arg1: i32) -> (i32, i32) {
    %c0_i32 = arith.constant 0 : i32
    %c0_i32_0 = arith.constant 0 : i32
    return %c0_i32, %arg1 : i32, i32
  }
  func.func @transform_3(%arg0: i32, %arg1: i32) -> (i32, i32) {
    %c0_i32 = arith.constant 0 : i32
    return %arg0, %arg1 : i32, i32
  }
}

</mosaic_0001>

<bundles_post_ra>
// kernel: tpu_custom_call.1
= control target key start
LH: loop header
LB: loop body
LE: loop exit
PB: predicated region body
PF: predicated region fallthrough
CT: control target
= control target key end

     0   :  { %vm364_vm0 = vcmask 1041408   ;;  %vm267_vm1 = vcmask 293888   ;;  %s1210_s0 = inlined_call_operand.vmem [shape: bf16[512,36], index: 0, kind: input, shape index: {}]   ;;  %s1211_s1 = inlined_call_operand.vmem [shape: bf16[36,128], index: 1, kind: input, shape index: {}]   ;;  %s1212_s2 = inlined_call_operand.vmem [shape: f32[1,128], index: 2, kind: input, shape index: {}]   ;;  %s1213_s3 = inlined_call_operand.hbm [shape: f32[512,128], index: 3, kind: output, shape index: {}]  }
   0x1   :  { %v921_v0 = vld [vmem:[%s1211_s1 + $0x10] ss:$0 sps:$4 sm:$0x33]   ;;  %v922_v1 = vld [vmem:[%s1211_s1 + $0x8] sm:$0xff]   ;;  %v923_v3 = vld [vmem:[%s1211_s1] sm:$0xff]  }
   0x2   :  { %916 = vmatprep.subr.msk.bf16.mxu0 %vm364_vm0, %v921_v0  ;;  %917 = vmatprep.subr.msk.bf16.mxu1 %vm364_vm0, %v921_v0  ;;  %v366_v2 = vsel %vm364_vm0, %v921_v0, 0  ;;  %v924_v4 = vld [vmem:[%s1210_s0] sm:$0xff]   ;;  %v926_v6 = vld [vmem:[%s1210_s0 + $0x8] sm:$0xff]   ;;  %v928_v8 = vld [vmem:[%s1210_s0 + $0x10] sm:$0xff]  }
   0x3   :  { %841 = vmatpush3.bf16.msra.mxu0 %v366_v2  ;;  %913 = vmatpush3.bf16.msra.mxu1 %v366_v2  ;;  %v925_v5 = vld [vmem:[%s1210_s0 + $0x80] sm:$0xff]   ;;  %v927_v7 = vld [vmem:[%s1210_s0 + $0x88] sm:$0xff]   ;;  %v929_v9 = vld [vmem:[%s1210_s0 + $0x90] sm:$0xff]  }
   0x4   :  { %842 = vmatprep.subr.bf16.mxu0 %v922_v1  ;;  %911 = vmatprep.subr.bf16.mxu1 %v922_v1  ;;  %v930_v10 = vld [vmem:[%s1210_s0 + $0x18] sm:$0xff]   ;;  %v932_v12 = vld [vmem:[%s1210_s0 + $0x20] sm:$0xff]   ;;  %v934_v14 = vld [vmem:[%s1210_s0 + $0x28] sm:$0xff]  }
   0x5   :  { %846 = vmatprep.mubr.msk.bf16.mxu0 %vm267_vm1, %v924_v4  ;;  %878 = vmatprep.mubr.msk.bf16.mxu1 %vm267_vm1, %v925_v5  ;;  %v931_v11 = vld [vmem:[%s1210_s0 + $0x98] sm:$0xff]   ;;  %v933_v13 = vld [vmem:[%s1210_s0 + $0xa0] sm:$0xff]   ;;  %v935_v15 = vld [vmem:[%s1210_s0 + $0xa8] sm:$0xff]  }
   0x6   :  { %v936_v16 = vld [vmem:[%s1210_s0 + $0x30] sm:$0xff]   ;;  %v938_v18 = vld [vmem:[%s1210_s0 + $0x38] sm:$0xff]   ;;  %v940_v20 = vld [vmem:[%s1210_s0 + $0x40] sm:$0xff]  }
   0x7   :  { %843 = vmatpush3.bf16.msra.mxu0 %v922_v1  ;;  %914 = vmatpush3.bf16.msra.mxu1 %v922_v1  ;;  %v937_v17 = vld [vmem:[%s1210_s0 + $0xb0] sm:$0xff]   ;;  %v939_v19 = vld [vmem:[%s1210_s0 + $0xb8] sm:$0xff]   ;;  %v941_v21 = vld [vmem:[%s1210_s0 + $0xc0] sm:$0xff]  }
   0x8   :  { %844 = vmatprep.subr.bf16.mxu0 %v923_v3  ;;  %912 = vmatprep.subr.bf16.mxu1 %v923_v3 }
   0xb   :  { %845 = vmatpush3.bf16.msra.mxu0 %v923_v3  ;;  %915 = vmatpush3.bf16.msra.mxu1 %v923_v3 }
   0xe   :  { %847 = vmatmul.mubr.msk.bf16.vlgmr.msra.gmra.mxu0 %vm267_vm1, %v926_v6  ;;  %879 = vmatmul.mubr.msk.bf16.vlgmr.msra.gmra.mxu1 %vm267_vm1, %v927_v7 }
   0xf   :  { %850 = vmatprep.mubr.msk.bf16.mxu0 %vm267_vm1, %v928_v8  ;;  %882 = vmatprep.mubr.msk.bf16.mxu1 %vm267_vm1, %v929_v9 }
  0x16   :  { %851 = vmatmul.mubr.msk.bf16.gmra.mxu0 %vm267_vm1, %v930_v10  ;;  %883 = vmatmul.mubr.msk.bf16.gmra.mxu1 %vm267_vm1, %v931_v11 }
  0x17   :  { %854 = vmatprep.mubr.msk.bf16.mxu0 %vm267_vm1, %v932_v12  ;;  %886 = vmatprep.mubr.msk.bf16.mxu1 %vm267_vm1, %v933_v13 }
  0x1e   :  { %855 = vmatmul.mubr.msk.bf16.gmra.mxu0 %vm267_vm1, %v934_v14  ;;  %887 = vmatmul.mubr.msk.bf16.gmra.mxu1 %vm267_vm1, %v935_v15 }
  0x1f   :  { %858 = vmatprep.mubr.msk.bf16.mxu0 %vm267_vm1, %v936_v16  ;;  %890 = vmatprep.mubr.msk.bf16.mxu1 %vm267_vm1, %v937_v17 }
  0x20   :  { %8 = vsyncpa [#allocation3], 0  ;;  %v942_v22 = vld [vmem:[%s1210_s0 + $0x48] sm:$0xff]   ;;  %v944_v24 = vld [vmem:[%s1210_s0 + $0x50] sm:$0xff]  }
  0x21   :  { %v943_v23 = vld [vmem:[%s1210_s0 + $0xc8] sm:$0xff]   ;;  %v945_v25 = vld [vmem:[%s1210_s0 + $0xd0] sm:$0xff]   ;;  %v946_v26 = vld [vmem:[%s1210_s0 + $0x58] sm:$0xff]  }
  0x22   :  { %v947_v27 = vld [vmem:[%s1210_s0 + $0xd8] sm:$0xff]   ;;  %v948_v28 = vld [vmem:[%s1210_s0 + $0x60] sm:$0xff]   ;;  %v950_v30 = vld [vmem:[%s1210_s0 + $0x68] sm:$0xff]  }
  0x23   :  { %v949_v29 = vld [vmem:[%s1210_s0 + $0xe0] sm:$0xff]   ;;  %v951_v31 = vld [vmem:[%s1210_s0 + $0xe8] sm:$0xff]   ;;  %v952_v32 = vld [vmem:[%s1210_s0 + $0x70] sm:$0xff]  }
  0x24   :  { %v953_v33 = vld [vmem:[%s1210_s0 + $0xf0] sm:$0xff]   ;;  %v954_v34 = vld [vmem:[%s1210_s0 + $0x78] sm:$0xff]   ;;  %v1141_v36 = vld [vmem:[%s1212_s2] ss:$0 sm:$0xff] }
  0x25   :  { %v955_v35 = vld [vmem:[%s1210_s0 + $0xf8] sm:$0xff]   ;;  %s978_s0 = smov [#allocation2]  }
  0x26   :  { %859 = vmatmul.mubr.msk.bf16.gmra.mxu0 %vm267_vm1, %v938_v18  ;;  %891 = vmatmul.mubr.msk.bf16.gmra.mxu1 %vm267_vm1, %v939_v19  ;;  %s726_s2 = sshll.u32 %s978_s0, 4  ;;  %s727_s2 = int_to_ptr.vmem [resolvable:$true] %s726_s2 }
  0x27   :  { %862 = vmatprep.mubr.msk.bf16.mxu0 %vm267_vm1, %v940_v20  ;;  %894 = vmatprep.mubr.msk.bf16.mxu1 %vm267_vm1, %v941_v21  ;;  %s956_s27 = scalar_lea.vmem %s727_s2, 8192  ;;  %p961_p1 = scmp.lt.s32.totalorder %s727_s2, %s727_s2 }
  0x28   :  { %p957_p0 = scmp.ne.s32.totalorder %s727_s2, %s956_s27  ;;  %p962_p2 = scmp.lt.s32.totalorder %s956_s27, %s956_s27 }
  0x2a   :  { %p963_p3 = por %p962_p2, %p961_p1 }
  0x2c   :  { %p964_p4 = pnand %p963_p3, %p957_p0 }
  0x2e   :  { %863 = vmatmul.mubr.msk.bf16.gmra.mxu0 %vm267_vm1, %v942_v22  ;;  %895 = vmatmul.mubr.msk.bf16.gmra.mxu1 %vm267_vm1, %v943_v23 }
  0x2f   :  { %866 = vmatprep.mubr.msk.bf16.mxu0 %vm267_vm1, %v944_v24  ;;  %898 = vmatprep.mubr.msk.bf16.mxu1 %vm267_vm1, %v945_v25 }
  0x36   :  { %867 = vmatmul.mubr.msk.bf16.gmra.mxu0 %vm267_vm1, %v946_v26  ;;  %899 = vmatmul.mubr.msk.bf16.gmra.mxu1 %vm267_vm1, %v947_v27 }
  0x37   :  { %870 = vmatprep.mubr.msk.bf16.mxu0 %vm267_vm1, %v948_v28  ;;  %902 = vmatprep.mubr.msk.bf16.mxu1 %vm267_vm1, %v949_v29 }
  0x3e   :  { %871 = vmatmul.mubr.msk.bf16.gmra.mxu0 %vm267_vm1, %v950_v30  ;;  %903 = vmatmul.mubr.msk.bf16.gmra.mxu1 %vm267_vm1, %v951_v31 }
  0x3f   :  { %874 = vmatprep.mubr.msk.bf16.mxu0 %vm267_vm1, %v952_v32  ;;  %906 = vmatprep.mubr.msk.bf16.mxu1 %vm267_vm1, %v953_v33 }
  0x46   :  { %875 = vmatmul.mubr.msk.bf16.gmra.mxu0 %vm267_vm1, %v954_v34  ;;  %907 = vmatmul.mubr.msk.bf16.gmra.mxu1 %vm267_vm1, %v955_v35 }
  0xce   :  { %v848_v37 = vpop.f32.mrf.mxu0  ;;  %v880_v38 = vpop.f32.mrf.mxu1 }
  0xcf   :  { %v411_v39 = vadd.f32 %v848_v37, %v1141_v36  ;;  %v539_v40 = vadd.f32 %v880_v38, %v1141_v36 }
  0xd0   :  { %v402_v41 = vpop.f32.mrf.mxu0  ;;  %v530_v42 = vpop.f32.mrf.mxu1 }
  0xd1   :  { %659 = vst [vmem:[#allocation2 + $0x10] sm:$0xff] %v411_v39  ;;  %691 = vst [vmem:[#allocation2 + $0x110] sm:$0xff] %v539_v40  ;;  %v403_v43 = vadd.f32 %v1141_v36, %v402_v41  ;;  %v531_v44 = vadd.f32 %v1141_v36, %v530_v42 }
  0xd2   :  { %v849_v45 = vpop.f32.mrf.mxu0  ;;  %v881_v46 = vpop.f32.mrf.mxu1 }
  0xd3   :  { %657 = vst [vmem:[#allocation2] sm:$0xff] %v403_v43  ;;  %689 = vst [vmem:[#allocation2 + $0x100] sm:$0xff] %v531_v44  ;;  %v414_v47 = vadd.f32 %v849_v45, %v1141_v36  ;;  %v542_v48 = vadd.f32 %v881_v46, %v1141_v36 }
  0xd4   :  { %v405_v49 = vpop.f32.mrf.mxu0  ;;  %v533_v50 = vpop.f32.mrf.mxu1 }
  0xd5   :  { %660 = vst [vmem:[#allocation2 + $0x18] sm:$0xff] %v414_v47  ;;  %692 = vst [vmem:[#allocation2 + $0x118] sm:$0xff] %v542_v48  ;;  %v406_v51 = vadd.f32 %v1141_v36, %v405_v49  ;;  %v534_v52 = vadd.f32 %v1141_v36, %v533_v50 }
  0xd6   :  { %v852_v53 = vpop.f32.mrf.mxu0  ;;  %v884_v54 = vpop.f32.mrf.mxu1 }
  0xd7   :  { %658 = vst [vmem:[#allocation2 + $0x8] sm:$0xff] %v406_v51  ;;  %690 = vst [vmem:[#allocation2 + $0x108] sm:$0xff] %v534_v52  ;;  %v427_v55 = vadd.f32 %v852_v53, %v1141_v36  ;;  %v555_v56 = vadd.f32 %v884_v54, %v1141_v36 }
  0xd8   :  { %v418_v57 = vpop.f32.mrf.mxu0  ;;  %v546_v58 = vpop.f32.mrf.mxu1 }
  0xd9   :  { %663 = vst [vmem:[#allocation2 + $0x30] sm:$0xff] %v427_v55  ;;  %695 = vst [vmem:[#allocation2 + $0x130] sm:$0xff] %v555_v56  ;;  %v419_v59 = vadd.f32 %v1141_v36, %v418_v57  ;;  %v547_v60 = vadd.f32 %v1141_v36, %v546_v58 }
  0xda   :  { %v853_v61 = vpop.f32.mrf.mxu0  ;;  %v885_v62 = vpop.f32.mrf.mxu1 }
  0xdb   :  { %661 = vst [vmem:[#allocation2 + $0x20] sm:$0xff] %v419_v59  ;;  %693 = vst [vmem:[#allocation2 + $0x120] sm:$0xff] %v547_v60  ;;  %v430_v63 = vadd.f32 %v853_v61, %v1141_v36  ;;  %v558_v0 = vadd.f32 %v885_v62, %v1141_v36 }
  0xdc   :  { %v421_v1 = vpop.f32.mrf.mxu0  ;;  %v549_v2 = vpop.f32.mrf.mxu1 }
  0xdd   :  { %664 = vst [vmem:[#allocation2 + $0x38] sm:$0xff] %v430_v63  ;;  %696 = vst [vmem:[#allocation2 + $0x138] sm:$0xff] %v558_v0  ;;  %v422_v3 = vadd.f32 %v1141_v36, %v421_v1  ;;  %v550_v4 = vadd.f32 %v1141_v36, %v549_v2 }
  0xde   :  { %v856_v5 = vpop.f32.mrf.mxu0  ;;  %v888_v6 = vpop.f32.mrf.mxu1 }
  0xdf   :  { %662 = vst [vmem:[#allocation2 + $0x28] sm:$0xff] %v422_v3  ;;  %694 = vst [vmem:[#allocation2 + $0x128] sm:$0xff] %v550_v4  ;;  %v443_v7 = vadd.f32 %v856_v5, %v1141_v36  ;;  %v571_v8 = vadd.f32 %v888_v6, %v1141_v36 }
  0xe0   :  { %v434_v9 = vpop.f32.mrf.mxu0  ;;  %v562_v10 = vpop.f32.mrf.mxu1 }
  0xe1   :  { %667 = vst [vmem:[#allocation2 + $0x50] sm:$0xff] %v443_v7  ;;  %699 = vst [vmem:[#allocation2 + $0x150] sm:$0xff] %v571_v8  ;;  %v435_v11 = vadd.f32 %v1141_v36, %v434_v9  ;;  %v563_v12 = vadd.f32 %v1141_v36, %v562_v10 }
  0xe2   :  { %v857_v13 = vpop.f32.mrf.mxu0  ;;  %v889_v14 = vpop.f32.mrf.mxu1 }
  0xe3   :  { %665 = vst [vmem:[#allocation2 + $0x40] sm:$0xff] %v435_v11  ;;  %697 = vst [vmem:[#allocation2 + $0x140] sm:$0xff] %v563_v12  ;;  %v446_v15 = vadd.f32 %v857_v13, %v1141_v36  ;;  %v574_v16 = vadd.f32 %v889_v14, %v1141_v36 }
  0xe4   :  { %v437_v17 = vpop.f32.mrf.mxu0  ;;  %v565_v18 = vpop.f32.mrf.mxu1 }
  0xe5   :  { %668 = vst [vmem:[#allocation2 + $0x58] sm:$0xff] %v446_v15  ;;  %700 = vst [vmem:[#allocation2 + $0x158] sm:$0xff] %v574_v16  ;;  %v438_v19 = vadd.f32 %v1141_v36, %v437_v17  ;;  %v566_v20 = vadd.f32 %v1141_v36, %v565_v18 }
  0xe6   :  { %v860_v21 = vpop.f32.mrf.mxu0  ;;  %v892_v22 = vpop.f32.mrf.mxu1 }
  0xe7   :  { %666 = vst [vmem:[#allocation2 + $0x48] sm:$0xff] %v438_v19  ;;  %698 = vst [vmem:[#allocation2 + $0x148] sm:$0xff] %v566_v20  ;;  %v459_v23 = vadd.f32 %v860_v21, %v1141_v36  ;;  %v587_v24 = vadd.f32 %v892_v22, %v1141_v36 }
  0xe8   :  { %v450_v25 = vpop.f32.mrf.mxu0  ;;  %v578_v26 = vpop.f32.mrf.mxu1 }
  0xe9   :  { %671 = vst [vmem:[#allocation2 + $0x70] sm:$0xff] %v459_v23  ;;  %703 = vst [vmem:[#allocation2 + $0x170] sm:$0xff] %v587_v24  ;;  %v451_v27 = vadd.f32 %v1141_v36, %v450_v25  ;;  %v579_v28 = vadd.f32 %v1141_v36, %v578_v26 }
  0xea   :  { %v861_v29 = vpop.f32.mrf.mxu0  ;;  %v893_v30 = vpop.f32.mrf.mxu1 }
  0xeb   :  { %669 = vst [vmem:[#allocation2 + $0x60] sm:$0xff] %v451_v27  ;;  %701 = vst [vmem:[#allocation2 + $0x160] sm:$0xff] %v579_v28  ;;  %v462_v31 = vadd.f32 %v861_v29, %v1141_v36  ;;  %v590_v32 = vadd.f32 %v893_v30, %v1141_v36 }
  0xec   :  { %v453_v33 = vpop.f32.mrf.mxu0  ;;  %v581_v34 = vpop.f32.mrf.mxu1 }
  0xed   :  { %672 = vst [vmem:[#allocation2 + $0x78] sm:$0xff] %v462_v31  ;;  %704 = vst [vmem:[#allocation2 + $0x178] sm:$0xff] %v590_v32  ;;  %v454_v35 = vadd.f32 %v1141_v36, %v453_v33  ;;  %v582_v37 = vadd.f32 %v1141_v36, %v581_v34 }
  0xee   :  { %v864_v38 = vpop.f32.mrf.mxu0  ;;  %v896_v39 = vpop.f32.mrf.mxu1 }
  0xef   :  { %670 = vst [vmem:[#allocation2 + $0x68] sm:$0xff] %v454_v35  ;;  %702 = vst [vmem:[#allocation2 + $0x168] sm:$0xff] %v582_v37  ;;  %v475_v40 = vadd.f32 %v864_v38, %v1141_v36  ;;  %v603_v41 = vadd.f32 %v896_v39, %v1141_v36 }
  0xf0   :  { %v466_v42 = vpop.f32.mrf.mxu0  ;;  %v594_v43 = vpop.f32.mrf.mxu1 }
  0xf1   :  { %675 = vst [vmem:[#allocation2 + $0x90] sm:$0xff] %v475_v40  ;;  %707 = vst [vmem:[#allocation2 + $0x190] sm:$0xff] %v603_v41  ;;  %v467_v44 = vadd.f32 %v1141_v36, %v466_v42  ;;  %v595_v45 = vadd.f32 %v1141_v36, %v594_v43 }
  0xf2   :  { %v865_v46 = vpop.f32.mrf.mxu0  ;;  %v897_v47 = vpop.f32.mrf.mxu1 }
  0xf3   :  { %673 = vst [vmem:[#allocation2 + $0x80] sm:$0xff] %v467_v44  ;;  %705 = vst [vmem:[#allocation2 + $0x180] sm:$0xff] %v595_v45  ;;  %v478_v48 = vadd.f32 %v865_v46, %v1141_v36  ;;  %v606_v49 = vadd.f32 %v897_v47, %v1141_v36 }
  0xf4   :  { %v469_v50 = vpop.f32.mrf.mxu0  ;;  %v597_v51 = vpop.f32.mrf.mxu1 }
  0xf5   :  { %676 = vst [vmem:[#allocation2 + $0x98] sm:$0xff] %v478_v48  ;;  %708 = vst [vmem:[#allocation2 + $0x198] sm:$0xff] %v606_v49  ;;  %v470_v52 = vadd.f32 %v1141_v36, %v469_v50  ;;  %v598_v53 = vadd.f32 %v1141_v36, %v597_v51 }
  0xf6   :  { %v868_v54 = vpop.f32.mrf.mxu0  ;;  %v900_v55 = vpop.f32.mrf.mxu1 }
  0xf7   :  { %674 = vst [vmem:[#allocation2 + $0x88] sm:$0xff] %v470_v52  ;;  %706 = vst [vmem:[#allocation2 + $0x188] sm:$0xff] %v598_v53  ;;  %v491_v56 = vadd.f32 %v868_v54, %v1141_v36  ;;  %v619_v57 = vadd.f32 %v900_v55, %v1141_v36 }
  0xf8   :  { %v482_v58 = vpop.f32.mrf.mxu0  ;;  %v610_v59 = vpop.f32.mrf.mxu1 }
  0xf9   :  { %679 = vst [vmem:[#allocation2 + $0xb0] sm:$0xff] %v491_v56  ;;  %711 = vst [vmem:[#allocation2 + $0x1b0] sm:$0xff] %v619_v57  ;;  %v483_v60 = vadd.f32 %v1141_v36, %v482_v58  ;;  %v611_v61 = vadd.f32 %v1141_v36, %v610_v59 }
  0xfa   :  { %v869_v62 = vpop.f32.mrf.mxu0  ;;  %v901_v63 = vpop.f32.mrf.mxu1 }
  0xfb   :  { %677 = vst [vmem:[#allocation2 + $0xa0] sm:$0xff] %v483_v60  ;;  %709 = vst [vmem:[#allocation2 + $0x1a0] sm:$0xff] %v611_v61  ;;  %v494_v0 = vadd.f32 %v869_v62, %v1141_v36  ;;  %v622_v1 = vadd.f32 %v901_v63, %v1141_v36 }
  0xfc   :  { %v485_v2 = vpop.f32.mrf.mxu0  ;;  %v613_v3 = vpop.f32.mrf.mxu1 }
  0xfd   :  { %680 = vst [vmem:[#allocation2 + $0xb8] sm:$0xff] %v494_v0  ;;  %712 = vst [vmem:[#allocation2 + $0x1b8] sm:$0xff] %v622_v1  ;;  %v486_v4 = vadd.f32 %v1141_v36, %v485_v2  ;;  %v614_v5 = vadd.f32 %v1141_v36, %v613_v3 }
  0xfe   :  { %v872_v6 = vpop.f32.mrf.mxu0  ;;  %v904_v7 = vpop.f32.mrf.mxu1 }
  0xff   :  { %678 = vst [vmem:[#allocation2 + $0xa8] sm:$0xff] %v486_v4  ;;  %710 = vst [vmem:[#allocation2 + $0x1a8] sm:$0xff] %v614_v5  ;;  %v507_v8 = vadd.f32 %v872_v6, %v1141_v36  ;;  %v635_v9 = vadd.f32 %v904_v7, %v1141_v36 }
 0x100   :  { %v498_v10 = vpop.f32.mrf.mxu0  ;;  %v626_v11 = vpop.f32.mrf.mxu1 }
 0x101   :  { %683 = vst [vmem:[#allocation2 + $0xd0] sm:$0xff] %v507_v8  ;;  %715 = vst [vmem:[#allocation2 + $0x1d0] sm:$0xff] %v635_v9  ;;  %v499_v12 = vadd.f32 %v1141_v36, %v498_v10  ;;  %v627_v13 = vadd.f32 %v1141_v36, %v626_v11 }
 0x102   :  { %v873_v14 = vpop.f32.mrf.mxu0  ;;  %v905_v15 = vpop.f32.mrf.mxu1 }
 0x103   :  { %681 = vst [vmem:[#allocation2 + $0xc0] sm:$0xff] %v499_v12  ;;  %713 = vst [vmem:[#allocation2 + $0x1c0] sm:$0xff] %v627_v13  ;;  %v510_v16 = vadd.f32 %v873_v14, %v1141_v36  ;;  %v638_v17 = vadd.f32 %v905_v15, %v1141_v36 }
 0x104   :  { %v501_v18 = vpop.f32.mrf.mxu0  ;;  %v629_v19 = vpop.f32.mrf.mxu1 }
 0x105   :  { %684 = vst [vmem:[#allocation2 + $0xd8] sm:$0xff] %v510_v16  ;;  %716 = vst [vmem:[#allocation2 + $0x1d8] sm:$0xff] %v638_v17  ;;  %v502_v20 = vadd.f32 %v1141_v36, %v501_v18  ;;  %v630_v21 = vadd.f32 %v1141_v36, %v629_v19 }
 0x106   :  { %v876_v22 = vpop.f32.mrf.mxu0  ;;  %v908_v23 = vpop.f32.mrf.mxu1 }
 0x107   :  { %682 = vst [vmem:[#allocation2 + $0xc8] sm:$0xff] %v502_v20  ;;  %714 = vst [vmem:[#allocation2 + $0x1c8] sm:$0xff] %v630_v21  ;;  %v523_v24 = vadd.f32 %v876_v22, %v1141_v36  ;;  %v651_v25 = vadd.f32 %v908_v23, %v1141_v36 }
 0x108   :  { %v514_v26 = vpop.f32.mrf.mxu0  ;;  %v642_v27 = vpop.f32.mrf.mxu1 }
 0x109   :  { %687 = vst [vmem:[#allocation2 + $0xf0] sm:$0xff] %v523_v24  ;;  %719 = vst [vmem:[#allocation2 + $0x1f0] sm:$0xff] %v651_v25  ;;  %v515_v28 = vadd.f32 %v1141_v36, %v514_v26  ;;  %v643_v29 = vadd.f32 %v1141_v36, %v642_v27 }
 0x10a   :  { %v877_v30 = vpop.f32.mrf.mxu0  ;;  %v909_v31 = vpop.f32.mrf.mxu1 }
 0x10b   :  { %685 = vst [vmem:[#allocation2 + $0xe0] sm:$0xff] %v515_v28  ;;  %717 = vst [vmem:[#allocation2 + $0x1e0] sm:$0xff] %v643_v29  ;;  %v526_v32 = vadd.f32 %v877_v30, %v1141_v36  ;;  %v654_v33 = vadd.f32 %v909_v31, %v1141_v36 }
 0x10c   :  { %v517_v34 = vpop.f32.mrf.mxu0  ;;  %v645_v35 = vpop.f32.mrf.mxu1 }
 0x10d   :  { %688 = vst [vmem:[#allocation2 + $0xf8] sm:$0xff] %v526_v32  ;;  %720 = vst [vmem:[#allocation2 + $0x1f8] sm:$0xff] %v654_v33  ;;  %v518_v37 = vadd.f32 %v1141_v36, %v517_v34  ;;  %v646_v38 = vadd.f32 %v1141_v36, %v645_v35 }
 0x10f   :  { %686 = vst [vmem:[#allocation2 + $0xe8] sm:$0xff] %v518_v37  ;;  %718 = vst [vmem:[#allocation2 + $0x1e8] sm:$0xff] %v646_v38 }
 0x110   :  { %967 = shalt.err (!%p964_p4)
}
 0x111   :  { %s979_s28 = smov 128   ;;  %s980_s29 = smov 8  }
 0x112   :  { %732 = dma.vmem_to_hbm [thread:$0]  %s727_s2, 8192, %s1213_s3, [#allocation3], %s979_s28, %s979_s28, %s980_s29  }
 0x113   :  { %976 = dma.done.wait [#allocation3], 8192  }
 0x114   :  { %977 = vsyncadd [#allocation3], 4294959104 }
 0x115   :  { %736 = vsyncpa [#allocation3], 1 }

</bundles_post_ra>
